<compile_context>
chip_gen: v7x
topology: tpu7x:2x2x1
jax: 0.10.0
libtpu: 0.0.40
codegen_flags: <defaults>
</compile_context>

<pallas_src>
from functools import partial

import jax
import jax.numpy as jnp
import numpy as np
from jax.experimental import pallas as pl
from jax.experimental.pallas import tpu as pltpu


def _cdiv(a, b):
    return -(-a // b)


def _round_up(x, m):
    return _cdiv(x, m) * m


def _causal_pad(x, K, dilation, stride):
    """Apply the module's (pad, extra_pad) with exact integer arithmetic.

    Matches torch.nn.functional.pad semantics: negative pads crop.
    """
    L = x.shape[-1]
    pad = dilation * (K - 1) - stride + 1
    n = L - K + pad
    ceil_next = -(-n // stride) + 1                     # integer-exact ceil(n/stride) + 1
    target_length = (ceil_next - 1) * stride + K - pad
    extra_pad = target_length - L
    lo = max(0, -pad)
    hi = L - max(0, -extra_pad)
    x = x[:, :, lo:hi]
    return jnp.pad(x, ((0, 0), (0, 0), (max(0, pad), max(0, extra_pad))))


def _make_kernel(K, dilation, stride, tl):
    def kernel(x_ref, w_ref, b_ref, o_ref):
        # x_ref: (C_in, TW) halo window   w_ref: (K, C_out, C_in)
        # b_ref: (C_out, 1)               o_ref: (C_out, TL)  (TL multiple of 128)
        def tap(k):
            start = k * dilation
            if stride == 1:
                sl = pl.ds(start, tl)
            else:
                # strided ref read along lanes (not exercised below; stride=1 in tests)
                sl = pl.ds(start, tl, stride=stride)
            return x_ref[:, sl]                          # (C_in, TL) direct VMEM load

        # K is small & static -> unrolled taps, each an MXU dot accumulated in f32.
        acc = jnp.dot(w_ref[0], tap(0), preferred_element_type=jnp.float32)
        for k in range(1, K):
            acc = acc + jnp.dot(w_ref[k], tap(k), preferred_element_type=jnp.float32)
        # Bias folded in at the epilogue (single VPU pass, hides under the store).
        o_ref[...] = (acc + b_ref[...]).astype(o_ref.dtype)

    return kernel


def causal_conv1d(x, weight, bias, *, dilation=1, stride=1, tl=512):
    """x: (B, C_in, L) NCL; weight: (C_out, C_in, K); bias: (C_out,) -> (B, C_out, L_out)."""
    B, C_in, L = x.shape
    C_out, _, K = weight.shape

    # Same padding behavior as the PyTorch module (integer-exact, crops negatives).
    x_cv = _causal_pad(x, K, dilation, stride)           # (B, C_in, L_cv)
    L_cv = x_cv.shape[-1]
    span = dilation * (K - 1) + 1
    L_out = (L_cv - span) // stride + 1

    # Output tiling along time (lanes).  TL multiple of 128 -> dense stores.
    TL = max(128, min(tl, _round_up(L_out, 128)))
    num_tiles = _cdiv(L_out, TL)
    L_out_pad = num_tiles * TL

    # Per-tile input window (with halo), rounded up to a lane multiple.
    TS = TL * stride                                     # window start spacing
    TW = _round_up((TL - 1) * stride + span, 128)        # window length
    M = _cdiv(TW, TS)                                    # TS-chunks covering one window
    n_chunks = max(num_tiles - 1 + M, _cdiv(L_cv, TS))
    L_ext = n_chunks * TS

    # Build (B, num_tiles, C_in, TW) halo windows with reshape/shift/concat only.
    x_ext = jnp.pad(x_cv, ((0, 0), (0, 0), (0, L_ext - L_cv)))
    chunks = jnp.transpose(x_ext.reshape(B, C_in, n_chunks, TS), (0, 2, 1, 3))
    windows = jnp.concatenate([chunks[:, m:m + num_tiles] for m in range(M)], axis=-1)
    x_tiles = windows[..., :TW]                          # (B, num_tiles, C_in, TW)

    # Weights as (K, C_out, C_in) so each tap is (C_out, C_in) @ (C_in, TL).
    w_koc = jnp.transpose(weight, (2, 0, 1))
    b2 = bias.reshape(C_out, 1)

    kernel = _make_kernel(K, dilation, stride, TL)

    itemsize = np.dtype(x.dtype).itemsize
    cost = pl.CostEstimate(
        flops=int(2 * B * L_out_pad * K * C_in * C_out),
        transcendentals=0,
        bytes_accessed=int((B * num_tiles * C_in * TW + K * C_in * C_out + C_out
                            + B * C_out * L_out_pad) * itemsize),
    )

    out = pl.pallas_call(
        kernel,
        out_shape=jax.ShapeDtypeStruct((B, C_out, L_out_pad), x.dtype),
        grid_spec=pltpu.PrefetchScalarGridSpec(
            num_scalar_prefetch=0,
            grid=(B, num_tiles),
            in_specs=[
                pl.BlockSpec((None, None, C_in, TW), lambda b, i: (b, i, 0, 0)),
                pl.BlockSpec((K, C_out, C_in), lambda b, i: (0, 0, 0)),
                pl.BlockSpec((C_out, 1), lambda b, i: (0, 0)),
            ],
            out_specs=pl.BlockSpec((None, C_out, TL), lambda b, i: (b, 0, i)),
        ),
        compiler_params=pltpu.CompilerParams(
            dimension_semantics=("parallel", "parallel"),
            vmem_limit_bytes=32 * 1024 * 1024,
        ),
        cost_estimate=cost,
    )(x_tiles, w_koc, b2)

    return out[:, :, :L_out]


def weight_norm(v, g):
    """PyTorch weight_norm: w = g * v / ||v||, norm over all dims but dim 0."""
    norm = jnp.sqrt(jnp.sum(v * v, axis=(1, 2), keepdims=True))
    return g * v / norm


def reference_causal_conv1d(x, weight, bias, *, dilation=1, stride=1):
    """Pure-JAX reference mirroring the PyTorch forward exactly."""
    K = weight.shape[-1]
    x_cv = _causal_pad(x, K, dilation, stride)
    out = jax.lax.conv_general_dilated(
        x_cv, weight,
        window_strides=(stride,), padding="VALID",
        rhs_dilation=(dilation,),
        dimension_numbers=("NCH", "OIH", "NCH"))
    return out + bias[None, :, None]


if __name__ == "__main__":
    def run_case(B, C_in, C_out, K, L, dilation, stride, seed):
        key = jax.random.PRNGKey(seed)
        kx, kv, kg, kb = jax.random.split(key, 4)
        x = jax.random.normal(kx, (B, C_in, L), dtype=jnp.float32)
        v = jax.random.normal(kv, (C_out, C_in, K), dtype=jnp.float32) * 0.2
        g = jax.random.normal(kg, (C_out, 1, 1), dtype=jnp.float32) * 0.5 + 1.0
        bias = jax.random.normal(kb, (C_out,), dtype=jnp.float32) * 0.1
        weight = weight_norm(v, g)                       # effective conv weight

        fn = jax.jit(partial(causal_conv1d, dilation=dilation, stride=stride))
        out = jax.block_until_ready(fn(x, weight, bias))
        ref = reference_causal_conv1d(x, weight, bias, dilation=dilation, stride=stride)
        assert out.shape == ref.shape == (B, C_out, L), (out.shape, ref.shape)
        np.testing.assert_allclose(np.asarray(out), np.asarray(ref),
                                   rtol=1e-5, atol=1e-5)

    # Small shapes consistent with the module's Conv1d.
    run_case(B=2, C_in=4, C_out=8, K=3, L=16, dilation=1, stride=1, seed=0)
    # Second config exercising dilation > 1 (wider causal halo).
    run_case(B=2, C_in=8, C_out=16, K=5, L=50, dilation=2, stride=1, seed=1)

    print("KERNEL_OK")
</pallas_src>

<mosaic_0001>
module attributes {stable_mosaic.version = 11 : i64} {
  func.func @kernel(%arg0: i32, %arg1: i32, %arg2: memref<1x1x4x256xf32, #tpu.memory_space<vmem>>, %arg3: memref<3x8x4xf32, #tpu.memory_space<vmem>>, %arg4: memref<8x1xf32, #tpu.memory_space<vmem>>, %arg5: memref<1x8x128xf32, #tpu.memory_space<vmem>>) attributes {dimension_semantics = [#tpu.dimension_semantics<parallel>, #tpu.dimension_semantics<parallel>], iteration_bounds = array<i64: 2, 1>, scalar_prefetch = 0 : i64, scratch_operands = 0 : i64, tpu.core_type = #tpu.core_type<tc>, window_params = [{transform_indices = @transform_0, window_bounds = array<i64: 1, 1, 4, 256>}, {pipeline_mode = #tpu.pipeline_mode<synchronous>, transform_indices = @transform_1, window_bounds = array<i64: 3, 8, 4>}, {pipeline_mode = #tpu.pipeline_mode<synchronous>, transform_indices = @transform_2, window_bounds = array<i64: 8, 1>}, {transform_indices = @transform_3, window_bounds = array<i64: 1, 8, 128>}]} {
    %c0 = arith.constant 0 : index
    %c0_0 = arith.constant 0 : index
    %c0_1 = arith.constant 0 : index
    %0 = vector.load %arg3[%c0, %c0_0, %c0_1] : memref<3x8x4xf32, #tpu.memory_space<vmem>>, vector<1x8x4xf32>
    %1 = vector.shape_cast %0 : vector<1x8x4xf32> to vector<8x4xf32>
    %c0_2 = arith.constant 0 : index
    %c0_3 = arith.constant 0 : index
    %c0_4 = arith.constant 0 : index
    %c0_5 = arith.constant 0 : index
    %2 = vector.load %arg2[%c0_2, %c0_3, %c0_4, %c0_5] : memref<1x1x4x256xf32, #tpu.memory_space<vmem>>, vector<1x1x4x128xf32>
    %3 = vector.shape_cast %2 : vector<1x1x4x128xf32> to vector<4x128xf32>
    %cst = arith.constant dense<0.000000e+00> : vector<8x128xf32>
    %4 = tpu.matmul %1, %3, %cst {dimension_numbers = #tpu.dot_dimension_numbers<[1], [0], [0], [1], [0, 0, 1, 1], [], []>} : vector<8x4xf32>, vector<4x128xf32>, vector<8x128xf32> -> vector<8x128xf32>
    %c1 = arith.constant 1 : index
    %c0_6 = arith.constant 0 : index
    %c0_7 = arith.constant 0 : index
    %5 = vector.load %arg3[%c1, %c0_6, %c0_7] : memref<3x8x4xf32, #tpu.memory_space<vmem>>, vector<1x8x4xf32>
    %6 = vector.shape_cast %5 : vector<1x8x4xf32> to vector<8x4xf32>
    %c0_8 = arith.constant 0 : index
    %c0_9 = arith.constant 0 : index
    %c0_10 = arith.constant 0 : index
    %c1_11 = arith.constant 1 : index
    %7 = vector.load %arg2[%c0_8, %c0_9, %c0_10, %c1_11] : memref<1x1x4x256xf32, #tpu.memory_space<vmem>>, vector<1x1x4x128xf32>
    %8 = vector.shape_cast %7 : vector<1x1x4x128xf32> to vector<4x128xf32>
    %cst_12 = arith.constant dense<0.000000e+00> : vector<8x128xf32>
    %9 = tpu.matmul %6, %8, %cst_12 {dimension_numbers = #tpu.dot_dimension_numbers<[1], [0], [0], [1], [0, 0, 1, 1], [], []>} : vector<8x4xf32>, vector<4x128xf32>, vector<8x128xf32> -> vector<8x128xf32>
    %10 = arith.addf %4, %9 : vector<8x128xf32>
    %c2 = arith.constant 2 : index
    %c0_13 = arith.constant 0 : index
    %c0_14 = arith.constant 0 : index
    %11 = vector.load %arg3[%c2, %c0_13, %c0_14] : memref<3x8x4xf32, #tpu.memory_space<vmem>>, vector<1x8x4xf32>
    %12 = vector.shape_cast %11 : vector<1x8x4xf32> to vector<8x4xf32>
    %c0_15 = arith.constant 0 : index
    %c0_16 = arith.constant 0 : index
    %c0_17 = arith.constant 0 : index
    %c2_18 = arith.constant 2 : index
    %13 = vector.load %arg2[%c0_15, %c0_16, %c0_17, %c2_18] : memref<1x1x4x256xf32, #tpu.memory_space<vmem>>, vector<1x1x4x128xf32>
    %14 = vector.shape_cast %13 : vector<1x1x4x128xf32> to vector<4x128xf32>
    %cst_19 = arith.constant dense<0.000000e+00> : vector<8x128xf32>
    %15 = tpu.matmul %12, %14, %cst_19 {dimension_numbers = #tpu.dot_dimension_numbers<[1], [0], [0], [1], [0, 0, 1, 1], [], []>} : vector<8x4xf32>, vector<4x128xf32>, vector<8x128xf32> -> vector<8x128xf32>
    %16 = arith.addf %10, %15 : vector<8x128xf32>
    %c0_20 = arith.constant 0 : index
    %c0_21 = arith.constant 0 : index
    %17 = vector.load %arg4[%c0_20, %c0_21] : memref<8x1xf32, #tpu.memory_space<vmem>>, vector<8x1xf32>
    %18 = vector.broadcast %17 : vector<8x1xf32> to vector<8x128xf32>
    %19 = arith.addf %16, %18 : vector<8x128xf32>
    %c0_22 = arith.constant 0 : index
    %c0_23 = arith.constant 0 : index
    %c0_24 = arith.constant 0 : index
    %20 = vector.load %arg5[%c0_22, %c0_23, %c0_24] : memref<1x8x128xf32, #tpu.memory_space<vmem>>, vector<1x8x128xf32>
    %21 = vector.shape_cast %20 : vector<1x8x128xf32> to vector<8x128xf32>
    %22 = vector.shape_cast %19 : vector<8x128xf32> to vector<1x8x128xf32>
    tpu.vector_store %arg5[%c0_22, %c0_23, %c0_24], %22 {strides = array<i32>} : memref<1x8x128xf32, #tpu.memory_space<vmem>>, vector<1x8x128xf32>,
    return
  }
  func.func @transform_0(%arg0: i32, %arg1: i32) -> (i32, i32, i32, i32) {
    %c0_i32 = arith.constant 0 : i32
    %c0_i32_0 = arith.constant 0 : i32
    %c0_i32_1 = arith.constant 0 : i32
    return %arg0, %arg1, %c0_i32, %c0_i32_0 : i32, i32, i32, i32
  }
  func.func @transform_1(%arg0: i32, %arg1: i32) -> (i32, i32, i32) {
    %c0_i32 = arith.constant 0 : i32
    %c0_i32_0 = arith.constant 0 : i32
    %c0_i32_1 = arith.constant 0 : i32
    %c0_i32_2 = arith.constant 0 : i32
    return %c0_i32, %c0_i32_0, %c0_i32_1 : i32, i32, i32
  }
  func.func @transform_2(%arg0: i32, %arg1: i32) -> (i32, i32) {
    %c0_i32 = arith.constant 0 : i32
    %c0_i32_0 = arith.constant 0 : i32
    %c0_i32_1 = arith.constant 0 : i32
    return %c0_i32, %c0_i32_0 : i32, i32
  }
  func.func @transform_3(%arg0: i32, %arg1: i32) -> (i32, i32, i32) {
    %c0_i32 = arith.constant 0 : i32
    %c0_i32_0 = arith.constant 0 : i32
    return %arg0, %c0_i32, %arg1 : i32, i32, i32
  }
}

</mosaic_0001>

<bundles_post_ra>
// kernel: causal_conv1d.1
= control target key start
LH: loop header
LB: loop body
LE: loop exit
PB: predicated region body
PF: predicated region fallthrough
CT: control target
= control target key end

     0   :  { %8 = vsyncpa [#allocation3], 0  ;;  %s893_s0 = inlined_call_operand.vmem [shape: f32[2,1,4,256], index: 0, kind: input, shape index: {}]   ;;  %s894_s1 = inlined_call_operand.vmem [shape: f32[3,8,4], index: 1, kind: input, shape index: {}]   ;;  %s895_s2 = inlined_call_operand.vmem [shape: f32[8,1], index: 2, kind: input, shape index: {}]   ;;  %s896_s3 = inlined_call_operand.hbm [shape: f32[2,8,128], index: 3, kind: output, shape index: {}]  }
   0x1   :  { %10 = vsyncpa [#allocation3 + $0x1], 0  ;;  %s760_s12 = smov 0   ;;  %s762_s13 = smov 0  }
   0x2   :  { %s764_s14 = smov 0   ;;  %s766_s15 = smov 0  }
   0x3   :  { %s768_s16 = smov 0   ;;  %s770_s17 = smov 0  }
   0x4 LB: > { %s550_s18 = sadd.s32 4294967295, %s732_s17   ;;  %s551_s19 = sadd.s32 4294967294, %s732_s17   ;;  %s732_s17 = sphi %s770_s17, %s16_s17   ;;  %s728_s16 = sphi %s768_s16, %s903_s16   ;;  %s724_s15 = sphi %s766_s15, %s902_s15   ;;  %s720_s14 = sphi %s764_s14, %s901_s14   ;;  %s716_s13 = sphi %s762_s13, %s900_s13   ;;  %s712_s12 = sphi %s760_s12, %s899_s12  }
   0x5   : > { %s28_s20 = sadd.s32 1, %s728_s16  ;;  %s107_s21 = sadd.s32 1, %s720_s14 }
   0x6   : > { %p30_p0 = scmp.ge.s32.totalorder %s28_s20, 2  ;;  %p117_p1 = scmp.ne.s32.totalorder %s720_s14, %s716_s13 }
   0x7   : > { %p118_p2 = scmp.eq.s32.totalorder %s550_s18, 1  ;;  %p123_p3 = scmp.ne.s32.totalorder %s716_s13, %s712_s12 }
   0x8   : > { %s905_s20 = smov (%p30_p0, %s28_s20), 0  ;;  %p124_p5 = scmp.eq.s32.totalorder %s551_s19, 1 }
   0x9   : > { %p800_p4 = por %p118_p2, %p117_p1  ;;  %s102_s23 = ssub.s32 %s728_s16, %s905_s20 }
   0xa   : > { %p554_p6 = scmp.ge.s32.totalorder %s732_s17, 1  ;;  %p105_p7 = scmp.eq.s32.totalorder %s102_s23, 0 }
   0xb   : > { %p807_p8 = por %p124_p5, %p123_p3  ;;  %p160_p9 = scmp.lt.s32.totalorder %s732_s17, 3 }
   0xc   : > { %s813_s25 = scalar_select %p105_p7, %s720_s14, %s107_s21  }
   0xd   : > { %p161_p10 = pnand %p554_p6, %p160_p9 }
   0xe   : > { %p188_p11 = scmp.lt.s32.totalorder (!%p161_p10), %s724_s15, 1  ;;  %v734_v0 = vmov (!%p161_p10), 0.0   ;;  %vm735_vm0 = vmmov (!%p161_p10), 0   ;;  %vm214_vm1 = vcmask (!%p161_p10), 1043456   ;;  %v736_v1 = vmov (!%p161_p10), 0   ;;  %v197_v4 = vld [vmem:[%s894_s1] sm:$0xff] (!%p161_p10) }
   0xf   : > { %164 = sbr.rel (%p161_p10) target bundleno = 382 (0x17e), region = 32  ;;  %577 = vmatprep.subr.mxu0 (!%p161_p10), %v734_v0  ;;  %582 = vmatprep.subr.mxu1 (!%p161_p10), %v734_v0  ;;  %vm210_vm2 = vcmask (!%p161_p10), 31744   ;;  %s737_s6 = smov (!%p161_p10), 126   ;;  %v450_v6 = vld [vmem:[%s895_s2] sm:$0xff] (!%p161_p10)  ;;  %vm208_vm3 = vcmask (!%p161_p10), 1039360   ;;  %vm372_vm4 = vcmask (!%p161_p10), 1031168  }
  0x10   : > { %579 = vmatprep.mubr.msk.f32.mxu0 (!%p161_p10), %vm735_vm0, %v734_v0  ;;  %584 = vmatprep.mubr.msk.f32.mxu1 (!%p161_p10), %vm735_vm0, %v734_v0  ;;  %s738_s7 = smov (!%p161_p10), 127   ;;  %v558_v11 = vld [vmem:[%s894_s1 + $0x8] sm:$0xff] (!%p161_p10)  ;;  %v563_v14 = vld [vmem:[%s894_s1 + $0x10] sm:$0xff] (!%p161_p10)  ;;  %s185_s21 = sand.u32 (!%p161_p10), 1, %s716_s13  }
  0x11   : > { %652 = vset.pattern.permute.xlu0 (!%p161_p10), %v736_v1  ;;  %s555_s23 = sshll.u32 (!%p161_p10), %s185_s21, 3  ;;  %s459_s5 = scalar_lea.sflag (!%p161_p10), [#allocation3], %s185_s21 }
  0x16   : > { %s189_s26 = scalar_select %p188_p11, %s724_s15, 1 }
  0x18   : > { %s570_s27 = sshll.u32 %s189_s26, 3  ;;  %s567_s26 = sshll.u32 %s724_s15, 7 }
  0x19   : > { %s196_s30 = scalar_lea.vmem %s893_s0, %s570_s27  ;;  %s187_s27 = scalar_lea.vmem [#allocation2], %s555_s23 }
  0x1a   : > { %v365_v2 = vld [vmem:[%s196_s30] sm:$0xff]  ;;  %s473_s28 = sshll.u32 %s187_s27, 4  ;;  %s846_s4 = scalar_lea.hbm %s896_s3, %s567_s26  ;;  %s848_s28 = int_to_ptr.vmem [resolvable:$true] %s473_s28 }
  0x1b   : > { %v198_v3 = vld [vmem:[%s196_s30] sm:$0xf]  ;;  %368 = vrot.lane.b32.xlu1 %v365_v2, %s737_s6  ;;  %v367_v5 = vcombine.high %v365_v2, %v365_v2  ;;  %204 = vrot.lane.b32.xlu0 %v365_v2, %s738_s7  ;;  %s739_s15 = smov [#allocation2]  }
  0x1c   : > { %583 = vmatpush3.msk.msra.mxu1 %vm214_vm1, %v198_v3 }
  0x1d   : > { %585 = vmatmul.mubr.msk.f32.vlgmr.msra.gmra.mrb[0].mxu1 %vm210_vm2, %v197_v4 }
  0x1f   : > { %370 = vrot.lane.b32.xlu1 %v367_v5, %s737_s6  ;;  %206 = vrot.lane.b32.xlu0 %v367_v5, %s738_s7  ;;  %s654_s6 = scalar_lea.vmem %s848_s28, 128  ;;  %s658_s7 = sshll.u32 %s739_s15, 4  ;;  %s659_s7 = int_to_ptr.vmem [resolvable:$false] %s658_s7 }
  0x20   : > { %p655_p12 = scmp.ne.s32.totalorder %s848_s28, %s654_s6  ;;  %s660_s8 = scalar_lea.vmem %s659_s7, 256 }
  0x21   : > { %p661_p1 = scmp.lt.s32.totalorder %s848_s28, %s659_s7  ;;  %p662_p2 = scmp.lt.s32.totalorder %s660_s8, %s654_s6 }
  0x22   : > { %p656_p13 = pnand %p655_p12, %p800_p4 }
  0x23   : > { %453 = vperm.xlu0 %652, %v450_v6   ;;  %p663_p3 = por %p662_p2, %p661_p1 }
  0x24   : > { %p657_p0 = pneg %p656_p13 }
  0x26   : > { %p664_p5 = pnand %p663_p3, %p657_p0 }
  0x8d   : > { %v369_v7 = vpop.permute.xlu1 %368  ;;  %v205_v8 = vpop.permute.xlu0 %204 }
  0x91   : > { %v371_v9 = vpop.permute.xlu1 %370  ;;  %v207_v10 = vpop.permute.xlu0 %206 }
  0x92   : > { %v209_v12 = vsel %vm208_vm3, %v205_v8, %v207_v10  ;;  %v373_v13 = vsel %vm372_vm4, %v369_v7, %v371_v9 }
  0x93   : > { %578 = vmatpush3.msk.msra.mxu0 %vm214_vm1, %v209_v12 }
  0x94   : > { %580 = vmatmul.mubr.msk.f32.vlgmr.msra.gmra.mrb[0].mxu0 %vm210_vm2, %v558_v11  ;;  %587 = vmatprep.subr.mxu0 %v734_v0 }
  0x95   : > { %588 = vmatpush3.msk.msra.mxu0 %vm214_vm1, %v373_v13  ;;  %589 = vmatprep.mubr.msk.f32.mxu0 %vm735_vm0, %v734_v0 }
  0x98   : > { %590 = vmatmul.mubr.msk.f32.vlgmr.msra.gmra.mrb[2].mxu0 %vm210_vm2, %v563_v14 }
  0xa2   : > { %v454_v21 = vpop.permute.xlu0 %453 }
  0xf0   : > { %v359_v15 = vpop.f32.mrb[0].mxu1 }
  0xf1   : > { %v586_v16 = vpop.f32.mrb[1].mxu1 }
 0x167   : > { %v283_v17 = vpop.f32.mrb[0].mxu0 }
 0x168   : > { %v581_v18 = vpop.f32.mrb[1].mxu0  ;;  %v360_v19 = vadd.f32 %v359_v15, %v283_v17 }
 0x16b   : > { %v445_v20 = vpop.f32.mrb[2].mxu0 }
 0x16c   : > { %v449_v22 = vadd.f32 %v445_v20, %v360_v19  ;;  %v591_v23 = vpop.f32.mrb[3].mxu0 }
 0x16e   : > { %v456_v24 = vadd.f32 %v454_v21, %v449_v22 }
 0x170   : > { %457 = vst [vmem:[%s187_s27] sm:$0xff] %v456_v24 }
 0x171   : > { %667 = shalt.err (!%p664_p5)
}
 0x172   : > { %s668_s9 = scalar_lea.hbm %s846_s4, 128  ;;  %s672_s18 = scalar_lea.hbm %s896_s3, 256 }
 0x173   : > { %p669_p6 = scmp.ne.s32.totalorder %s846_s4, %s668_s9  ;;  %p673_p10 = scmp.lt.u32.totalorder %s846_s4, %s896_s3 }
 0x174   : > { %p674_p11 = scmp.lt.u32.totalorder %s672_s18, %s668_s9  ;;  %p676_p13 = scmp.lt.u32.totalorder %s668_s9, %s846_s4 }
 0x175   : > { %p670_p7 = pnand %p669_p6, %p800_p4 }
 0x176   : > { %p675_p12 = por %p674_p11, %p673_p10 }
 0x177   : > { %p671_p9 = pneg %p670_p7 }
 0x178   : > { %p677_p0 = por %p676_p13, %p675_p12 }
 0x17a   : > { %p678_p1 = pnand %p677_p0, %p671_p9 }
 0x17c   : > { %681 = shalt.err (!%p678_p1)
}
 0x17d   : > { %592 = dma.vmem_to_hbm [thread:$0]  (%p800_p4), %s848_s28, 128, %s846_s4, %s459_s5  }
 0x17e PF: > { %p598_p2 = scmp.ge.s32.totalorder %s732_s17, 2  ;;  %s485_s23 = sand.u32 1, %s712_s12  }
 0x17f   : > { %s486_s26 = scalar_lea.sflag [#allocation3], %s485_s23 }
 0x180   : > { %p595_p3 = pnand %p598_p2, %p807_p8 }
 0x182   : > { %707 = dma.done.wait (!%p595_p3), %s486_s26, 128  }
 0x183   : > { %709 = vsyncadd (!%p595_p3), %s486_s26, 4294967168  ;;  %s16_s17 = sadd.s32 1, %s732_s17   ;;  %s899_s12 = smov %s716_s13 }
 0x184   : > { %p13_p5 = scmp.ge.s32.totalorder %s16_s17, 4   ;;  %s900_s13 = smov %s720_s14 }
 0x185   : > { %s901_s14 = smov %s813_s25  ;;  %s902_s15 = smov %s728_s16 }
 0x186   : > { %s903_s16 = smov %s905_s20  ;;  %15 = sbr.rel (!%p13_p5) target bundleno = 4 (0x4), region = 69 }
 0x18d   :  { %491 = vsyncpa [#allocation3], 1 }
 0x18e   :  { %493 = vsyncpa [#allocation3 + $0x1], 1 }

</bundles_post_ra>
